<compile_context>
chip_gen: v7x
topology: tpu7x:2x2x1
jax: 0.10.0
libtpu: 0.0.40
codegen_flags: <defaults>
</compile_context>

<pallas_src>
import functools

import jax
import jax.numpy as jnp
from jax.experimental import pallas as pl
from jax.experimental.pallas import tpu as pltpu


def _round_up(x: int, m: int) -> int:
    return ((x + m - 1) // m) * m


def _cdiv(a: int, b: int) -> int:
    return -(-a // b)


def _vmem_budget_bytes() -> int:
    try:
        cap = int(pltpu.get_tpu_info().vmem_capacity_bytes)
    except Exception:
        cap = 64 << 20  # conservative fallback: v7x per-TensorCore VMEM
    return int(cap * 0.80)  # leave headroom for Mosaic internal scratch


def _linear_kernel(x_ref, w_ref, b_ref, o_ref):
    # x_ref: (tm, D) caller dtype, w_ref: (D, tn) bf16, b_ref: (1, tn) f32,
    # o_ref: (tm, tn) caller dtype.  Cast x to bf16 under the MXU shadow,
    # accumulate in f32, single bias-add + cast epilogue before the store.
    x = x_ref[...].astype(jnp.bfloat16)
    acc = jnp.dot(x, w_ref[...], preferred_element_type=jnp.float32)
    o_ref[...] = (acc + b_ref[...]).astype(o_ref.dtype)


def prepare_linear_params(weight, bias):
    """One-time parameter prep (do at load time, not per call).

    weight: (N, D) PyTorch nn.Linear layout -> (D, N) bf16, plus f32 bias.
    """
    w_t = jnp.asarray(weight).T.astype(jnp.bfloat16)  # (D, N)
    b = jnp.asarray(bias).astype(jnp.float32)         # (N,)
    return w_t, b


@functools.partial(jax.jit, static_argnames=("up_scale",))
def linear_upsampling(x, w_t, bias, *, up_scale):
    """x: (S, B, D). w_t: (D, N) bf16 (pre-transposed). bias: (N,) f32.

    Returns (S*up_scale, B, D), matching the PyTorch module's forward.
    """
    S, B, D = x.shape
    Dw, N = w_t.shape
    assert Dw == D and N == D * up_scale

    M = S * B
    out_dtype = x.dtype
    x_bpe = jnp.dtype(x.dtype).itemsize
    out_bpe = jnp.dtype(out_dtype).itemsize

    x2 = x.reshape(M, D)                          # metadata-only reshape
    w = w_t.astype(jnp.bfloat16)                  # no-op when pre-prepared
    b2 = bias.astype(jnp.float32).reshape(1, N)   # tiny (N elems)

    vmem_budget = _vmem_budget_bytes()

    def pick_tm(fixed_bytes, n_cols):
        tm = 8
        for cand in (512, 384, 256, 128, 64, 32, 16, 8):
            per_tile = 2 * cand * (D * x_bpe + n_cols * out_bpe)
            if fixed_bytes + per_tile <= vmem_budget:
                tm = cand
                break
        tm = min(tm, _round_up(M, 8))
        # Keep >= 2 row blocks where possible so the "parallel" grid axis can
        # be sharded across both TensorCores on v7x.
        if _cdiv(M, tm) < 2 and M > 8:
            tm = _round_up(_cdiv(M, 2), 8)
        return tm

    # Conservative residency estimate: double-buffered weight + bias.
    w_resident_bytes = 2 * (D * N * 2) + 2 * (N * 4)
    min_row_tile = 2 * 8 * (D * x_bpe + N * out_bpe)

    if w_resident_bytes + min_row_tile <= vmem_budget:
        # ---- Path A: weight fully VMEM-resident, 1-D grid over rows -------
        tm = pick_tm(w_resident_bytes, N)
        grid = (_cdiv(M, tm),)
        cost = pl.CostEstimate(
            flops=2 * M * N * D,
            bytes_accessed=(M * D * x_bpe + D * N * 2 + N * 4
                            + M * N * out_bpe),
            transcendentals=0)
        y = pl.pallas_call(
            _linear_kernel,
            out_shape=jax.ShapeDtypeStruct((M, N), out_dtype),
            grid_spec=pltpu.PrefetchScalarGridSpec(
                num_scalar_prefetch=0,
                grid=grid,
                in_specs=[
                    pl.BlockSpec((tm, D), lambda i: (i, 0)),   # x row tile
                    pl.BlockSpec((D, N), lambda i: (0, 0)),    # resident W
                    pl.BlockSpec((1, N), lambda i: (0, 0)),    # resident bias
                ],
                out_specs=pl.BlockSpec((tm, N), lambda i: (i, 0)),
            ),
            compiler_params=pltpu.CompilerParams(
                dimension_semantics=("parallel",),
                vmem_limit_bytes=vmem_budget),
            cost_estimate=cost,
        )(x2, w, b2)
    else:
        # ---- Path B: weight too large for VMEM -> tile the output columns -
        tn = min(512, _round_up(N, 128))
        fixed = 2 * (D * tn * 2 + tn * 4)
        tm = pick_tm(fixed, tn)
        n_i, n_j = _cdiv(M, tm), _cdiv(N, tn)
        x_refetch = M * D * x_bpe * (n_j - 1)   # extra bytes if N outermost
        w_refetch = D * N * 2 * (n_i - 1)       # extra bytes if M outermost
        if w_refetch >= x_refetch:
            # N outermost: the weight is streamed from HBM exactly once.
            grid = (n_j, n_i)
            x_map, w_map = (lambda j, i: (i, 0)), (lambda j, i: (0, j))
            b_map, o_map = (lambda j, i: (0, j)), (lambda j, i: (i, j))
            extra = x_refetch
        else:
            grid = (n_i, n_j)
            x_map, w_map = (lambda i, j: (i, 0)), (lambda i, j: (0, j))
            b_map, o_map = (lambda i, j: (0, j)), (lambda i, j: (i, j))
            extra = w_refetch
        cost = pl.CostEstimate(
            flops=2 * M * N * D,
            bytes_accessed=(M * D * x_bpe + D * N * 2 + N * 4
                            + M * N * out_bpe + extra),
            transcendentals=0)
        y = pl.pallas_call(
            _linear_kernel,
            out_shape=jax.ShapeDtypeStruct((M, N), out_dtype),
            grid_spec=pltpu.PrefetchScalarGridSpec(
                num_scalar_prefetch=0,
                grid=grid,
                in_specs=[
                    pl.BlockSpec((tm, D), x_map),
                    pl.BlockSpec((D, tn), w_map),
                    pl.BlockSpec((1, tn), b_map),
                ],
                out_specs=pl.BlockSpec((tm, tn), o_map),
            ),
            compiler_params=pltpu.CompilerParams(
                dimension_semantics=("parallel", "parallel"),
                vmem_limit_bytes=vmem_budget),
            cost_estimate=cost,
        )(x2, w, b2)

    # Row-major reshapes reproduce the PyTorch `.view(-1, B, d_model)`.
    y = y.reshape(S, B, N)
    return y.reshape(S * up_scale, B, D)


if __name__ == "__main__":
    d_model = 32
    up_scale = 2
    seq_len = 8
    batch = 4

    key = jax.random.PRNGKey(0)
    kx, kw, kb = jax.random.split(key, 3)

    x = jax.random.normal(kx, (seq_len, batch, d_model), dtype=jnp.float32)

    # Deterministic init mimicking nn.Linear's uniform(-1/sqrt(D), 1/sqrt(D)).
    bound = 1.0 / (d_model ** 0.5)
    weight = jax.random.uniform(
        kw, (d_model * up_scale, d_model), minval=-bound, maxval=bound,
        dtype=jnp.float32)
    bias = jax.random.uniform(
        kb, (d_model * up_scale,), minval=-bound, maxval=bound,
        dtype=jnp.float32)

    # One-time parameter prep (pre-transposed bf16 weight).
    w_t, b = prepare_linear_params(weight, bias)

    out = linear_upsampling(x, w_t, b, up_scale=up_scale)
    out = jax.block_until_ready(out)

    # Pure-JAX f32 reference of the exact PyTorch semantics.
    ref = (x @ weight.T + bias).reshape(-1, batch, d_model)
    assert out.shape == (seq_len * up_scale, batch, d_model), out.shape
    # Tolerance relaxed: matmul inputs are bf16 (f32 accumulation).
    assert jnp.allclose(out, ref, atol=5e-2, rtol=5e-2), (
        float(jnp.max(jnp.abs(out - ref))))

    print("KERNEL_OK")
</pallas_src>

<mosaic_0001>
module attributes {stable_mosaic.version = 11 : i64} {
  func.func @_linear_kernel(%arg0: i32, %arg1: memref<16x32xf32, #tpu.memory_space<vmem>>, %arg2: memref<32x64xbf16, #tpu.memory_space<vmem>>, %arg3: memref<1x64xf32, #tpu.memory_space<vmem>>, %arg4: memref<16x64xf32, #tpu.memory_space<vmem>>) attributes {dimension_semantics = [#tpu.dimension_semantics<parallel>], iteration_bounds = array<i64: 2>, scalar_prefetch = 0 : i64, scratch_operands = 0 : i64, tpu.core_type = #tpu.core_type<tc>, window_params = [{transform_indices = @transform_0, window_bounds = array<i64: 16, 32>}, {pipeline_mode = #tpu.pipeline_mode<synchronous>, transform_indices = @transform_1, window_bounds = array<i64: 32, 64>}, {pipeline_mode = #tpu.pipeline_mode<synchronous>, transform_indices = @transform_2, window_bounds = array<i64: 1, 64>}, {transform_indices = @transform_3, window_bounds = array<i64: 16, 64>}]} {
    %c0 = arith.constant 0 : index
    %c0_0 = arith.constant 0 : index
    %0 = vector.load %arg1[%c0, %c0_0] : memref<16x32xf32, #tpu.memory_space<vmem>>, vector<16x32xf32>
    %1 = arith.truncf %0 : vector<16x32xf32> to vector<16x32xbf16>
    %c0_1 = arith.constant 0 : index
    %c0_2 = arith.constant 0 : index
    %2 = vector.load %arg2[%c0_1, %c0_2] : memref<32x64xbf16, #tpu.memory_space<vmem>>, vector<32x64xbf16>
    %cst = arith.constant dense<0.000000e+00> : vector<16x64xf32>
    %3 = tpu.matmul %1, %2, %cst {dimension_numbers = #tpu.dot_dimension_numbers<[1], [0], [0], [1], [0, 0, 1, 1], [], []>} : vector<16x32xbf16>, vector<32x64xbf16>, vector<16x64xf32> -> vector<16x64xf32>
    %c0_3 = arith.constant 0 : index
    %c0_4 = arith.constant 0 : index
    %4 = vector.load %arg3[%c0_3, %c0_4] : memref<1x64xf32, #tpu.memory_space<vmem>>, vector<1x64xf32>
    %5 = vector.broadcast %4 : vector<1x64xf32> to vector<16x64xf32>
    %6 = arith.addf %3, %5 : vector<16x64xf32>
    %c0_5 = arith.constant 0 : index
    %c0_6 = arith.constant 0 : index
    %7 = vector.load %arg4[%c0_5, %c0_6] : memref<16x64xf32, #tpu.memory_space<vmem>>, vector<16x64xf32>
    tpu.vector_store %arg4[%c0_5, %c0_6], %6 {strides = array<i32>} : memref<16x64xf32, #tpu.memory_space<vmem>>, vector<16x64xf32>,
    return
  }
  func.func @transform_0(%arg0: i32) -> (i32, i32) {
    %c0_i32 = arith.constant 0 : i32
    %c0_i32_0 = arith.constant 0 : i32
    return %arg0, %c0_i32 : i32, i32
  }
  func.func @transform_1(%arg0: i32) -> (i32, i32) {
    %c0_i32 = arith.constant 0 : i32
    %c0_i32_0 = arith.constant 0 : i32
    %c0_i32_1 = arith.constant 0 : i32
    return %c0_i32, %c0_i32_0 : i32, i32
  }
  func.func @transform_2(%arg0: i32) -> (i32, i32) {
    %c0_i32 = arith.constant 0 : i32
    %c0_i32_0 = arith.constant 0 : i32
    %c0_i32_1 = arith.constant 0 : i32
    return %c0_i32, %c0_i32_0 : i32, i32
  }
  func.func @transform_3(%arg0: i32) -> (i32, i32) {
    %c0_i32 = arith.constant 0 : i32
    %c0_i32_0 = arith.constant 0 : i32
    return %arg0, %c0_i32 : i32, i32
  }
}

</mosaic_0001>

<bundles_post_ra>
// kernel: linear_upsampling.1
= control target key start
LH: loop header
LB: loop body
LE: loop exit
PB: predicated region body
PF: predicated region fallthrough
CT: control target
= control target key end

     0   :  { %8 = vsyncpa [#allocation3], 0  ;;  %s723_s0 = inlined_call_operand.hbm [shape: f32[32,32], index: 0, kind: input, shape index: {}]   ;;  %s724_s1 = inlined_call_operand.hbm [shape: bf16[32,64], index: 1, kind: input, shape index: {}]   ;;  %s725_s2 = inlined_call_operand.vmem [shape: f32[1,64], index: 2, kind: input, shape index: {}]   ;;  %s726_s3 = inlined_call_operand.vmem [shape: f32[32,64], index: 3, kind: output, shape index: {}]  }
   0x1   :  { %10 = vsyncpa [#allocation3 + $0x1], 0 }
   0x2   :  { %11 = vsyncpa [#allocation5], 0  ;;  %s575_s12 = smov 0   ;;  %s577_s13 = smov 0  }
   0x3   :  { %s579_s14 = smov 0   ;;  %s581_s15 = smov 0  }
   0x4 LB: > { %s360_s16 = sadd.s32 4294967295, %s545_s15   ;;  %p37_p0 = scmp.ne.s32.totalorder %s537_s13, %s533_s12  ;;  %s545_s15 = sphi %s581_s15, %s742_s15   ;;  %s541_s14 = sphi %s579_s14, %s741_s14   ;;  %s537_s13 = sphi %s577_s13, %s740_s13   ;;  %s533_s12 = sphi %s575_s12, %s739_s12  }
   0x5   : > { %p597_p1 = scmp.eq.s32.totalorder %s360_s16, 0  ;;  %p362_p2 = scmp.ge.s32.totalorder %s545_s15, 1 }
   0x6   : > { %p116_p3 = scmp.lt.s32.totalorder %s545_s15, 3  ;;  %s547_s20 = smov [#allocation4]  }
   0x7   : > { %s731_s17 = scalar_select %p597_p1, 1, 0 }
   0x8   : > { %p605_p4 = por %p597_p1, %p37_p0  ;;  %p609_p5 = pnand %p362_p2, %p116_p3 }
   0x9   : > { %s128_s21 = sshll.u32 %s547_s20, 4  ;;  %s622_s23 = sadd.s32 1, %s545_s15   ;;  %s129_s21 = int_to_ptr.vmem [resolvable:$true] %s128_s21 }
   0xa   : > { %s732_s18 = scalar_select %p605_p4, 1, 0 }
   0xb   : > { %s733_s19 = scalar_select %p609_p5, 1, 0 }
   0xc   : > { %p397_p6 = pneg %p609_p5  ;;  %s24_s24 = sadd.s32 1, %s541_s14 }
   0xd   : > { %s21_s25 = ssub.s32 %s545_s15, %s622_s23  ;;  %s449_s28 = scalar_lea.hbm %s724_s1, 256 }
   0xe   : > { %p617_p7 = pnand %p397_p6, %p597_p1  ;;  %p450_p8 = scmp.ne.s32.totalorder %s724_s1, %s449_s28 }
   0xf   : > { %p456_p12 = scmp.lt.u32.totalorder %s449_s28, %s724_s1 }
  0x10   : > { %p451_p9 = pneg %p617_p7 }
  0x12   : > { %p452_p10 = pnand %p451_p9, %p450_p8 }
  0x14   : > { %p453_p11 = pneg %p452_p10 }
  0x16   : > { %p458_p13 = pnand %p456_p12, %p453_p11 }
  0x18   : > { %461 = shalt.err (!%p458_p13)
}
  0x19   : > { %s462_s6 = scalar_lea.vmem %s129_s21, 256  ;;  %p470_p6 = scmp.lt.s32.totalorder %s129_s21, %s129_s21 }
  0x1a   : > { %p463_p0 = scmp.ne.s32.totalorder %s129_s21, %s462_s6  ;;  %p471_p1 = scmp.lt.s32.totalorder %s462_s6, %s462_s6 }
  0x1c   : > { %p465_p2 = pnand %p463_p0, %p451_p9  ;;  %p472_p4 = por %p471_p1, %p470_p6 }
  0x1e   : > { %p466_p3 = pneg %p465_p2 }
  0x20   : > { %p473_p5 = pnand %p472_p4, %p466_p3 }
  0x22   : > { %476 = shalt.err (!%p473_p5)
}
  0x23   : > { %s548_s7 = smov 64   ;;  %s549_s8 = smov 4  }
  0x24   : > { %400 = dma.hbm_to_vmem [thread:$0]  (!%p617_p7), %s724_s1, 256, %s129_s21, [#allocation5], %s548_s7, %s548_s7, %s549_s8  }
  0x25   : > { %p22_p8 = scmp.eq.s32.totalorder %s21_s25, 0  ;;  %p31_p9 = scmp.ne.s32.totalorder %s541_s14, %s537_s13 }
  0x26   : > { %p32_p1 = scmp.eq.s32.totalorder %s545_s15, 0  ;;  %p406_p4 = scmp.lt.s32.totalorder %s545_s15, 2 }
  0x27   : > { %s648_s11 = scalar_select %p22_p8, %s541_s14, %s24_s24  }
  0x28   : > { %p33_p5 = por %p32_p1, %p31_p9  ;;  %s145_s12 = sand.u32 1, %s541_s14  }
  0x29   : > { %s365_s20 = sshll.u32 %s145_s12, 4  ;;  %s379_s26 = sshll.u32 %s545_s15, 8 }
  0x2a   : > { %s655_s29 = scalar_lea.hbm %s723_s0, %s379_s26  ;;  %s149_s21 = scalar_lea.vmem [#allocation2], %s365_s20 }
  0x2b   : > { %s156_s22 = sshll.u32 %s149_s21, 4  ;;  %p659_p7 = pnand %p406_p4, %p33_p5  ;;  %s657_s22 = int_to_ptr.vmem [resolvable:$true] %s156_s22 }
  0x2c   : > { %s663_s25 = scalar_lea.sflag [#allocation3], %s145_s12  ;;  %s477_s30 = scalar_lea.hbm %s655_s29, 256 }
  0x2d   : > { %p478_p10 = scmp.ne.s32.totalorder %s655_s29, %s477_s30  ;;  %p479_p11 = pneg %p659_p7 }
  0x2e   : > { %s482_s6 = scalar_lea.hbm %s723_s0, 512  ;;  %p483_p0 = scmp.lt.u32.totalorder %s655_s29, %s723_s0 }
  0x2f   : > { %p480_p12 = pnand %p479_p11, %p478_p10  ;;  %p484_p2 = scmp.lt.u32.totalorder %s482_s6, %s477_s30 }
  0x30   : > { %p486_p6 = scmp.lt.u32.totalorder %s477_s30, %s655_s29 }
  0x31   : > { %p481_p13 = pneg %p480_p12  ;;  %p485_p3 = por %p484_p2, %p483_p0 }
  0x33   : > { %p487_p8 = por %p486_p6, %p485_p3 }
  0x35   : > { %p488_p9 = pnand %p487_p8, %p481_p13 }
  0x37   : > { %491 = shalt.err (!%p488_p9)
}
  0x38   : > { %s492_s9 = scalar_lea.vmem %s657_s22, 256  ;;  %s550_s10 = smov [#allocation2]  }
  0x39   : > { %p493_p1 = scmp.ne.s32.totalorder %s657_s22, %s492_s9  ;;  %s497_s12 = sshll.u32 %s550_s10, 4  ;;  %s498_s12 = int_to_ptr.vmem [resolvable:$false] %s497_s12 }
  0x3a   : > { %s499_s20 = scalar_lea.vmem %s498_s12, 512  ;;  %p500_p10 = scmp.lt.s32.totalorder %s657_s22, %s498_s12 }
  0x3b   : > { %p495_p4 = pnand %p493_p1, %p479_p11  ;;  %p501_p12 = scmp.lt.s32.totalorder %s499_s20, %s492_s9 }
  0x3d   : > { %p496_p5 = pneg %p495_p4  ;;  %p502_p0 = por %p501_p12, %p500_p10 }
  0x3f   : > { %p503_p2 = pnand %p502_p0, %p496_p5 }
  0x41   : > { %506 = shalt.err (!%p503_p2)
}
  0x42   : > { %s551_s26 = smov 128   ;;  %s552_s27 = smov 8  }
  0x43   : > { %404 = dma.hbm_to_vmem [thread:$0]  (!%p659_p7), %s655_s29, 256, %s657_s22, %s663_s25, %s551_s26, %s551_s26, %s552_s27  }
  0x44   : > { %p736_p11 = scmp.ne.s32.totalorder %s733_s19, 0 }
  0x45   : > { %s170_s28 = sand.u32 (!%p736_p11), 1, %s537_s13   ;;  %p737_p13 = scmp.ne.s32.totalorder (!%p736_p11), %s732_s18, 0 }
  0x46   : > { %168 = sbr.rel (%p736_p11) target bundleno = 307 (0x133), region = 32  ;;  %s369_s21 = sshll.u32 (!%p736_p11), %s170_s28, 4 }
  0x47   : > { %s171_s30 = scalar_lea.sflag (!%p736_p11), [#allocation3], %s170_s28  ;;  %s174_s4 = scalar_lea.vmem (!%p736_p11), [#allocation2], %s369_s21 }
  0x4d   : > { %524 = dma.done.wait (%p737_p13), %s171_s30, 256  }
  0x4e   : > { %526 = vsyncadd (%p737_p13), %s171_s30, 4294967040  ;;  %p738_p3 = scmp.ne.s32.totalorder %s731_s17, 0 }
  0x50   : > { %528 = dma.done.wait (%p738_p3), [#allocation5], 256  }
  0x51   : > { %530 = vsyncadd (%p738_p3), [#allocation5], 4294967040  ;;  %v553_v0 = vmov 0.0   ;;  %vm554_vm0 = vmmov 0   ;;  %v447_v1 = vld [vmem:[#allocation4] sm:$0xff]   ;;  %v448_v2 = vld [vmem:[#allocation4 + $0x8] sm:$0xff]  }
  0x52   : > { %383 = vmatprep.subr.bf16.mxu0 %v553_v0  ;;  %387 = vmatprep.mubr.msk.bf16.mxu0 %vm554_vm0, %v553_v0  ;;  %v209_v3 = vld [vmem:[%s174_s4] sm:$0xff]  ;;  %v210_v4 = vld [vmem:[%s174_s4 + $0x8] sm:$0xff]  ;;  %vm235_vm1 = vcmask 261120   ;;  %s371_s18 = sshll.u32 %s360_s16, 1  ;;  %vm280_vm2 = vcmask 523264  }
  0x53   : > { %384 = vmatpush3.bf16.msra.mxu0 %v447_v1  ;;  %v211_v5 = vpack.c.bf16 %v210_v4, %v209_v3  ;;  %p203_p7 = scmp.lt.s32.totalorder %s371_s18, 3  ;;  %v373_v6 = vld [vmem:[%s725_s2] ss:$0 sm:$0xff] }
  0x54   : > { %385 = vmatprep.subr.bf16.mxu0 %v553_v0 }
  0x55   : > { %s744_s18 = smov (!%p203_p7, %s371_s18), 3 }
  0x56   : > { %s372_s17 = sshll.u32 %s744_s18, 3 }
  0x57   : > { %386 = vmatpush3.bf16.msra.mxu0 %v448_v2  ;;  %s206_s25 = scalar_lea.vmem %s726_s3, %s372_s17 }
  0x5a   : > { %388 = vmatmul.mubr.msk.bf16.vlgmr.msra.gmra.mrb[0].mxu0 %vm235_vm1, %v211_v5 }
 0x12d   : > { %v273_v7 = vpop.f32.mrb[0].mxu0 }
 0x12e   : > { %v274_v8 = vadd.f32 %v373_v6, %v273_v7  ;;  %v389_v9 = vpop.f32.mrb[1].mxu0 }
 0x12f   : > { %v276_v10 = vpop.f32.mrb[2].mxu0 }
 0x130   : > { %281 = vst.msk [vmem:[%s206_s25] sm:$0xff] %vm280_vm2, %v274_v8  ;;  %v277_v11 = vadd.f32 %v373_v6, %v276_v10  ;;  %v390_v12 = vpop.f32.mrb[3].mxu0 }
 0x132   : > { %282 = vst.msk [vmem:[%s206_s25 + $0x8] sm:$0xff] %vm280_vm2, %v277_v11 }
 0x133 PF: > { %p14_p6 = scmp.ge.s32.totalorder %s622_s23, 4   ;;  %s739_s12 = smov %s537_s13 }
 0x134   : > { %s740_s13 = smov %s541_s14  ;;  %s741_s14 = smov %s648_s11 }
 0x135   : > { %s742_s15 = smov %s622_s23  ;;  %16 = sbr.rel (!%p14_p6) target bundleno = 4 (0x4), region = 76 }
 0x13c   :  { %305 = vsyncpa [#allocation3], 1 }
 0x13d   :  { %307 = vsyncpa [#allocation3 + $0x1], 1 }
 0x13e   :  { %308 = vsyncpa [#allocation5], 1 }

</bundles_post_ra>
